<compile_context>
chip_gen: v6e
topology: v6e:2x2x1
jax: 0.10.0
libtpu: 0.0.40
codegen_flags: <defaults>
</compile_context>

<pallas_src>
import functools

import jax
import jax.numpy as jnp
from jax.experimental import pallas as pl
from jax.experimental.pallas import tpu as pltpu


def _round_up(x, m):
    return ((x + m - 1) // m) * m


def text_classifier_kernel(ids_ref,   # (S, tb)  int32  — batch on lanes
                           emb_t_ref, # (E, V)   f32    — resident embedding^T
                           w1_ref,    # (H, E)   f32    — torch (out, in) layout
                           b1_ref,    # (H, 1)   f32
                           w2_ref,    # (1, H)   f32
                           b2_ref,    # (1, 1)   f32
                           out_ref):  # (1, tb)  f32    — lane-dense output block
    seq, tb = ids_ref.shape
    _, vocab = emb_t_ref.shape

    ids = ids_ref[...]                                              # (S, tb)
    vocab_iota = jax.lax.broadcasted_iota(jnp.int32, (vocab, tb), 0)

    # counts[v, b] = number of sequence positions with token v for batch b.
    # S is small/static -> unrolled Python loop of (V, tb) VPU compares.
    counts = jnp.zeros((vocab, tb), dtype=jnp.float32)
    for s in range(seq):
        counts += (ids[s:s + 1, :] == vocab_iota).astype(jnp.float32)

    # Embedding + mean over sequence, batch on lanes:  (E, V) @ (V, tb).
    mean_emb_t = jnp.dot(emb_t_ref[...], counts,
                         preferred_element_type=jnp.float32) * (1.0 / seq)

    # fc1 + ReLU:  (H, E) @ (E, tb).
    h = jnp.dot(w1_ref[...], mean_emb_t,
                preferred_element_type=jnp.float32) + b1_ref[...]
    h = jnp.maximum(h, 0.0)

    # fc2 (+ sigmoid):  (1, H) @ (H, tb)  -> already lane-dense (1, tb).
    logits = jnp.dot(w2_ref[...], h,
                     preferred_element_type=jnp.float32) + b2_ref[...]
    out_ref[...] = jax.nn.sigmoid(logits)


@functools.partial(jax.jit, static_argnames=("tb",))
def text_classifier(ids, emb, w1, b1, w2, b2, *, tb=128):
    """ids (B,S) int32; emb (V,E); w1 (H,E); b1 (H,); w2 (1,H); b2 (1,).

    Weights use the native torch nn.Linear (out_features, in_features) layout.
    Returns (B, 1) float32, matching the PyTorch module.
    """
    B, S = ids.shape
    V, E = emb.shape
    H = w1.shape[0]

    # Batch lives on the lane axis: the tile must be a multiple of 128 or
    # cover the whole (padded) batch in a single block.
    if B <= tb:
        b_pad = _round_up(B, 8)
        tb = b_pad
    else:
        assert tb % 128 == 0, "tb must be a multiple of 128 when tiling the batch"
        b_pad = _round_up(B, tb)
    n_tiles = b_pad // tb

    # Transposed, padded token ids: (S, B_pad) with batch on the last axis.
    ids_t = jnp.zeros((S, b_pad), jnp.int32).at[:, :B].set(ids.T.astype(jnp.int32))

    emb_t = emb.T.astype(jnp.float32)          # (E, V), VMEM-resident
    w1c = w1.astype(jnp.float32)               # (H, E)
    b1c = b1.reshape(H, 1).astype(jnp.float32)
    w2c = w2.astype(jnp.float32)               # (1, H)
    b2c = b2.reshape(1, 1).astype(jnp.float32)

    grid_spec = pltpu.PrefetchScalarGridSpec(
        num_scalar_prefetch=0,
        grid=(n_tiles,),
        in_specs=[
            pl.BlockSpec((S, tb), lambda i: (0, i)),   # ids tile (batch on lanes)
            pl.BlockSpec((E, V), lambda i: (0, 0)),    # embedding table, resident
            pl.BlockSpec((H, E), lambda i: (0, 0)),    # fc1 weight, resident
            pl.BlockSpec((H, 1), lambda i: (0, 0)),    # fc1 bias
            pl.BlockSpec((1, H), lambda i: (0, 0)),    # fc2 weight
            pl.BlockSpec((1, 1), lambda i: (0, 0)),    # fc2 bias
        ],
        out_specs=pl.BlockSpec((1, tb), lambda i: (0, i)),
    )

    cost = pl.CostEstimate(
        flops=(b_pad * S * V                     # one-hot/count compares
               + 2 * b_pad * V * E               # counts @ emb^T
               + 2 * b_pad * E * H               # fc1
               + 2 * b_pad * H),                 # fc2
        transcendentals=b_pad,                   # one sigmoid exp per row
        bytes_accessed=(b_pad * S * 4            # token ids
                        + (V * E + H * E + H + H + 1) * 4  # params
                        + b_pad * 4),            # output
    )

    out = pl.pallas_call(
        text_classifier_kernel,
        out_shape=jax.ShapeDtypeStruct((1, b_pad), jnp.float32),
        grid_spec=grid_spec,
        compiler_params=pltpu.CompilerParams(
            dimension_semantics=("parallel",),   # batch tiles are independent
        ),
        cost_estimate=cost,
    )(ids_t, emb_t, w1c, b1c, w2c, b2c)

    return out[0, :B].reshape(B, 1)


def reference(ids, emb, w1, b1, w2, b2):
    x = emb[ids]                              # (B, S, E)
    x = x.mean(axis=1)                        # (B, E)
    x = jnp.maximum(x @ w1.T + b1, 0.0)       # (B, H)
    return jax.nn.sigmoid(x @ w2.T + b2)      # (B, 1)


if __name__ == "__main__":
    vocab_size, embedding_dim, hidden_dim = 32, 8, 4
    batch, seq = 200, 8          # pads to 256 -> 2 batch tiles of 128 (exercises grid + padding)

    key = jax.random.PRNGKey(0)
    k_ids, k_emb, k_w1, k_b1, k_w2, k_b2 = jax.random.split(key, 6)

    ids = jax.random.randint(k_ids, (batch, seq), 0, vocab_size, dtype=jnp.int32)
    emb = jax.random.normal(k_emb, (vocab_size, embedding_dim), dtype=jnp.float32)
    # torch nn.Linear layout: weight (out_features, in_features), bias (out_features,)
    w1 = jax.random.normal(k_w1, (hidden_dim, embedding_dim), dtype=jnp.float32) * 0.3
    b1 = jax.random.normal(k_b1, (hidden_dim,), dtype=jnp.float32) * 0.1
    w2 = jax.random.normal(k_w2, (1, hidden_dim), dtype=jnp.float32) * 0.3
    b2 = jax.random.normal(k_b2, (1,), dtype=jnp.float32) * 0.1

    out = text_classifier(ids, emb, w1, b1, w2, b2, tb=128)
    out = jax.block_until_ready(out)

    ref = reference(ids, emb, w1, b1, w2, b2)
    assert out.shape == (batch, 1), out.shape
    assert jnp.allclose(out, ref, atol=1e-5, rtol=1e-5), (
        float(jnp.max(jnp.abs(out - ref))))

    print("KERNEL_OK")
</pallas_src>

<mosaic_0001>
module attributes {stable_mosaic.version = 11 : i64} {
  func.func @text_classifier_kernel(%arg0: i32, %arg1: memref<8x128xi32, #tpu.memory_space<vmem>>, %arg2: memref<8x32xf32, #tpu.memory_space<vmem>>, %arg3: memref<4x8xf32, #tpu.memory_space<vmem>>, %arg4: memref<4x1xf32, #tpu.memory_space<vmem>>, %arg5: memref<1x4xf32, #tpu.memory_space<vmem>>, %arg6: memref<1x1xf32, #tpu.memory_space<vmem>>, %arg7: memref<1x128xf32, #tpu.memory_space<vmem>>) attributes {dimension_semantics = [#tpu.dimension_semantics<parallel>], iteration_bounds = array<i64: 2>, scalar_prefetch = 0 : i64, scratch_operands = 0 : i64, tpu.core_type = #tpu.core_type<tc>, window_params = [{transform_indices = @transform_0, window_bounds = array<i64: 8, 128>}, {pipeline_mode = #tpu.pipeline_mode<synchronous>, transform_indices = @transform_1, window_bounds = array<i64: 8, 32>}, {pipeline_mode = #tpu.pipeline_mode<synchronous>, transform_indices = @transform_2, window_bounds = array<i64: 4, 8>}, {pipeline_mode = #tpu.pipeline_mode<synchronous>, transform_indices = @transform_3, window_bounds = array<i64: 4, 1>}, {pipeline_mode = #tpu.pipeline_mode<synchronous>, transform_indices = @transform_4, window_bounds = array<i64: 1, 4>}, {pipeline_mode = #tpu.pipeline_mode<synchronous>, transform_indices = @transform_5, window_bounds = array<i64: 1, 1>}, {transform_indices = @transform_6, window_bounds = array<i64: 1, 128>}]} {
    %c0 = arith.constant 0 : index
    %c0_0 = arith.constant 0 : index
    %0 = vector.load %arg1[%c0, %c0_0] : memref<8x128xi32, #tpu.memory_space<vmem>>, vector<8x128xi32>
    %1 = tpu.iota {dimensions = array<i32: 0>} : vector<32x128xi32>
    %cst = arith.constant 0.000000e+00 : f32
    %2 = vector.broadcast %cst : f32 to vector<32x128xf32>
    %3 = vector.extract_strided_slice %0 {offsets = [0, 0], sizes = [1, 128], strides = [1, 1]} : vector<8x128xi32> to vector<1x128xi32>
    %4 = vector.broadcast %3 : vector<1x128xi32> to vector<32x128xi32>
    %5 = arith.cmpi eq, %4, %1 : vector<32x128xi32>
    %6 = arith.extui %5 : vector<32x128xi1> to vector<32x128xi32>
    %7 = arith.sitofp %6 : vector<32x128xi32> to vector<32x128xf32>
    %8 = arith.addf %2, %7 : vector<32x128xf32>
    %9 = vector.extract_strided_slice %0 {offsets = [1, 0], sizes = [1, 128], strides = [1, 1]} : vector<8x128xi32> to vector<1x128xi32>
    %10 = vector.broadcast %9 : vector<1x128xi32> to vector<32x128xi32>
    %11 = arith.cmpi eq, %10, %1 : vector<32x128xi32>
    %12 = arith.extui %11 : vector<32x128xi1> to vector<32x128xi32>
    %13 = arith.sitofp %12 : vector<32x128xi32> to vector<32x128xf32>
    %14 = arith.addf %8, %13 : vector<32x128xf32>
    %15 = vector.extract_strided_slice %0 {offsets = [2, 0], sizes = [1, 128], strides = [1, 1]} : vector<8x128xi32> to vector<1x128xi32>
    %16 = vector.broadcast %15 : vector<1x128xi32> to vector<32x128xi32>
    %17 = arith.cmpi eq, %16, %1 : vector<32x128xi32>
    %18 = arith.extui %17 : vector<32x128xi1> to vector<32x128xi32>
    %19 = arith.sitofp %18 : vector<32x128xi32> to vector<32x128xf32>
    %20 = arith.addf %14, %19 : vector<32x128xf32>
    %21 = vector.extract_strided_slice %0 {offsets = [3, 0], sizes = [1, 128], strides = [1, 1]} : vector<8x128xi32> to vector<1x128xi32>
    %22 = vector.broadcast %21 : vector<1x128xi32> to vector<32x128xi32>
    %23 = arith.cmpi eq, %22, %1 : vector<32x128xi32>
    %24 = arith.extui %23 : vector<32x128xi1> to vector<32x128xi32>
    %25 = arith.sitofp %24 : vector<32x128xi32> to vector<32x128xf32>
    %26 = arith.addf %20, %25 : vector<32x128xf32>
    %27 = vector.extract_strided_slice %0 {offsets = [4, 0], sizes = [1, 128], strides = [1, 1]} : vector<8x128xi32> to vector<1x128xi32>
    %28 = vector.broadcast %27 : vector<1x128xi32> to vector<32x128xi32>
    %29 = arith.cmpi eq, %28, %1 : vector<32x128xi32>
    %30 = arith.extui %29 : vector<32x128xi1> to vector<32x128xi32>
    %31 = arith.sitofp %30 : vector<32x128xi32> to vector<32x128xf32>
    %32 = arith.addf %26, %31 : vector<32x128xf32>
    %33 = vector.extract_strided_slice %0 {offsets = [5, 0], sizes = [1, 128], strides = [1, 1]} : vector<8x128xi32> to vector<1x128xi32>
    %34 = vector.broadcast %33 : vector<1x128xi32> to vector<32x128xi32>
    %35 = arith.cmpi eq, %34, %1 : vector<32x128xi32>
    %36 = arith.extui %35 : vector<32x128xi1> to vector<32x128xi32>
    %37 = arith.sitofp %36 : vector<32x128xi32> to vector<32x128xf32>
    %38 = arith.addf %32, %37 : vector<32x128xf32>
    %39 = vector.extract_strided_slice %0 {offsets = [6, 0], sizes = [1, 128], strides = [1, 1]} : vector<8x128xi32> to vector<1x128xi32>
    %40 = vector.broadcast %39 : vector<1x128xi32> to vector<32x128xi32>
    %41 = arith.cmpi eq, %40, %1 : vector<32x128xi32>
    %42 = arith.extui %41 : vector<32x128xi1> to vector<32x128xi32>
    %43 = arith.sitofp %42 : vector<32x128xi32> to vector<32x128xf32>
    %44 = arith.addf %38, %43 : vector<32x128xf32>
    %45 = vector.extract_strided_slice %0 {offsets = [7, 0], sizes = [1, 128], strides = [1, 1]} : vector<8x128xi32> to vector<1x128xi32>
    %46 = vector.broadcast %45 : vector<1x128xi32> to vector<32x128xi32>
    %47 = arith.cmpi eq, %46, %1 : vector<32x128xi32>
    %48 = arith.extui %47 : vector<32x128xi1> to vector<32x128xi32>
    %49 = arith.sitofp %48 : vector<32x128xi32> to vector<32x128xf32>
    %50 = arith.addf %44, %49 : vector<32x128xf32>
    %c0_1 = arith.constant 0 : index
    %c0_2 = arith.constant 0 : index
    %51 = vector.load %arg2[%c0_1, %c0_2] : memref<8x32xf32, #tpu.memory_space<vmem>>, vector<8x32xf32>
    %cst_3 = arith.constant dense<0.000000e+00> : vector<8x128xf32>
    %52 = tpu.matmul %51, %50, %cst_3 {dimension_numbers = #tpu.dot_dimension_numbers<[1], [0], [0], [1], [0, 0, 1, 1], [], []>} : vector<8x32xf32>, vector<32x128xf32>, vector<8x128xf32> -> vector<8x128xf32>
    %cst_4 = arith.constant 1.250000e-01 : f32
    %53 = vector.broadcast %cst_4 : f32 to vector<8x128xf32>
    %54 = arith.mulf %52, %53 : vector<8x128xf32>
    %c0_5 = arith.constant 0 : index
    %c0_6 = arith.constant 0 : index
    %55 = vector.load %arg3[%c0_5, %c0_6] : memref<4x8xf32, #tpu.memory_space<vmem>>, vector<4x8xf32>
    %cst_7 = arith.constant dense<0.000000e+00> : vector<4x128xf32>
    %56 = tpu.matmul %55, %54, %cst_7 {dimension_numbers = #tpu.dot_dimension_numbers<[1], [0], [0], [1], [0, 0, 1, 1], [], []>} : vector<4x8xf32>, vector<8x128xf32>, vector<4x128xf32> -> vector<4x128xf32>
    %c0_8 = arith.constant 0 : index
    %c0_9 = arith.constant 0 : index
    %57 = vector.load %arg4[%c0_8, %c0_9] : memref<4x1xf32, #tpu.memory_space<vmem>>, vector<4x1xf32>
    %58 = vector.broadcast %57 : vector<4x1xf32> to vector<4x128xf32>
    %59 = arith.addf %56, %58 : vector<4x128xf32>
    %cst_10 = arith.constant 0.000000e+00 : f32
    %60 = vector.broadcast %cst_10 : f32 to vector<4x128xf32>
    %61 = arith.maximumf %59, %60 : vector<4x128xf32>
    %c0_11 = arith.constant 0 : index
    %c0_12 = arith.constant 0 : index
    %62 = vector.load %arg5[%c0_11, %c0_12] : memref<1x4xf32, #tpu.memory_space<vmem>>, vector<1x4xf32>
    %cst_13 = arith.constant dense<0.000000e+00> : vector<1x128xf32>
    %63 = tpu.matmul %62, %61, %cst_13 {dimension_numbers = #tpu.dot_dimension_numbers<[1], [0], [0], [1], [0, 0, 1, 1], [], []>} : vector<1x4xf32>, vector<4x128xf32>, vector<1x128xf32> -> vector<1x128xf32>
    %c0_14 = arith.constant 0 : index
    %c0_15 = arith.constant 0 : index
    %64 = vector.load %arg6[%c0_14, %c0_15] : memref<1x1xf32, #tpu.memory_space<vmem>>, vector<1x1xf32>
    %65 = vector.broadcast %64 : vector<1x1xf32> to vector<1x128xf32>
    %66 = arith.addf %63, %65 : vector<1x128xf32>
    %67 = arith.negf %66 : vector<1x128xf32>
    %68 = math.exp %67 : vector<1x128xf32>
    %cst_16 = arith.constant 1.000000e+00 : f32
    %69 = vector.broadcast %cst_16 : f32 to vector<1x128xf32>
    %70 = arith.addf %69, %68 : vector<1x128xf32>
    %71 = arith.divf %69, %70 : vector<1x128xf32>
    %c0_17 = arith.constant 0 : index
    %c0_18 = arith.constant 0 : index
    %72 = vector.load %arg7[%c0_17, %c0_18] : memref<1x128xf32, #tpu.memory_space<vmem>>, vector<1x128xf32>
    tpu.vector_store %arg7[%c0_17, %c0_18], %71 {strides = array<i32>} : memref<1x128xf32, #tpu.memory_space<vmem>>, vector<1x128xf32>,
    return
  }
  func.func @transform_0(%arg0: i32) -> (i32, i32) {
    %c0_i32 = arith.constant 0 : i32
    %c0_i32_0 = arith.constant 0 : i32
    return %c0_i32, %arg0 : i32, i32
  }
  func.func @transform_1(%arg0: i32) -> (i32, i32) {
    %c0_i32 = arith.constant 0 : i32
    %c0_i32_0 = arith.constant 0 : i32
    %c0_i32_1 = arith.constant 0 : i32
    return %c0_i32, %c0_i32_0 : i32, i32
  }
  func.func @transform_2(%arg0: i32) -> (i32, i32) {
    %c0_i32 = arith.constant 0 : i32
    %c0_i32_0 = arith.constant 0 : i32
    %c0_i32_1 = arith.constant 0 : i32
    return %c0_i32, %c0_i32_0 : i32, i32
  }
  func.func @transform_3(%arg0: i32) -> (i32, i32) {
    %c0_i32 = arith.constant 0 : i32
    %c0_i32_0 = arith.constant 0 : i32
    %c0_i32_1 = arith.constant 0 : i32
    return %c0_i32, %c0_i32_0 : i32, i32
  }
  func.func @transform_4(%arg0: i32) -> (i32, i32) {
    %c0_i32 = arith.constant 0 : i32
    %c0_i32_0 = arith.constant 0 : i32
    %c0_i32_1 = arith.constant 0 : i32
    return %c0_i32, %c0_i32_0 : i32, i32
  }
  func.func @transform_5(%arg0: i32) -> (i32, i32) {
    %c0_i32 = arith.constant 0 : i32
    %c0_i32_0 = arith.constant 0 : i32
    %c0_i32_1 = arith.constant 0 : i32
    return %c0_i32, %c0_i32_0 : i32, i32
  }
  func.func @transform_6(%arg0: i32) -> (i32, i32) {
    %c0_i32 = arith.constant 0 : i32
    %c0_i32_0 = arith.constant 0 : i32
    return %c0_i32, %arg0 : i32, i32
  }
}

</mosaic_0001>

<bundles_post_ra>
// kernel: text_classifier.1
= control target key start
LH: loop header
LB: loop body
LE: loop exit
PB: predicated region body
PF: predicated region fallthrough
CT: control target
= control target key end

     0   :  { %s854_s23 = smov 0   ;;  %s1019_s0 = inlined_call_operand.vmem [shape: s32[8,256], index: 0, kind: input, shape index: {}]   ;;  %s1020_s1 = inlined_call_operand.vmem [shape: f32[8,32], index: 1, kind: input, shape index: {}]   ;;  %s1021_s2 = inlined_call_operand.vmem [shape: f32[4,8], index: 2, kind: input, shape index: {}]   ;;  %s1022_s3 = inlined_call_operand.vmem [shape: f32[4,1], index: 3, kind: input, shape index: {}]   ;;  %s1023_s4 = inlined_call_operand.vmem [shape: f32[1,4], index: 4, kind: input, shape index: {}]   ;;  %s1024_s5 = inlined_call_operand.<no memory space> [shape: f32[1,1], index: 5, kind: input, shape index: {}]   ;;  %s1025_s6 = inlined_call_operand.vmem [shape: f32[1,256], index: 6, kind: output, shape index: {}]  }
   0x1   :  { %v11_v0 = vstv %s1024_s5 }
   0x2   :  { %12 = vst [vmem:[#allocation2] sm:$0x1] %v11_v0 }
   0x3 LB: > { %s714_s24 = sadd.s32 4294967295, %s811_s23   ;;  %p718_p0 = scmp.ge.s32.totalorder %s811_s23, 1  ;;  %s811_s23 = sphi %s854_s23, %s18_s23  }
   0x4   : > { %p213_p1 = scmp.lt.s32.totalorder %s811_s23, 3 }
   0x6   : > { %p214_p2 = pnand %p718_p0, %p213_p1 }
   0x7   : > { %p240_p3 = scmp.lt.s32.totalorder (!%p214_p2), %s714_s24, 1 }
   0x8   : > { %217 = sbr.rel (%p214_p2) target bundleno = 676 (0x2a4), region = 44 }
   0xd   : > { %v248_v1 = vlaneseq  ;;  %v813_v2 = vmov 0.0   ;;  %vm814_vm0 = vmmov 0   ;;  %s1027_s24 = smov (!%p240_p3, %s714_s24), 1 }
   0xe   : > { %768 = vmatprep.subr.mxu0 %v813_v2  ;;  %776 = vmatprep.mubr.msk.f32.mxu0 %vm814_vm0, %v813_v2  ;;  %s719_s5 = sshll.u32 %s1027_s24, 3  ;;  %s246_s14 = scalar_lea.vmem %s1025_s6, %s1027_s24 }
   0xf   : > { %v867_v3 = vshrl.u32 %v248_v1, 7  ;;  %779 = vmatprep.subr.mxu1 %v813_v2  ;;  %781 = vmatprep.mubr.msk.f32.mxu1 %vm814_vm0, %v813_v2  ;;  %s243_s27 = scalar_lea.vmem %s1019_s0, %s719_s5 }
  0x10   : > { %v247_v12 = vld [vmem:[%s243_s27] sm:$0xff] }
  0x11   : > { %v252_v4 = vadd.s32 24, %v867_v3  ;;  %v255_v5 = vsub.s32 0, %v867_v3  ;;  %v275_v6 = vsub.s32 1, %v867_v3  ;;  %v295_v7 = vsub.s32 2, %v867_v3 }
  0x12   : > { %v315_v8 = vsub.s32 3, %v867_v3  ;;  %v335_v9 = vsub.s32 4, %v867_v3  ;;  %v355_v10 = vsub.s32 5, %v867_v3  ;;  %v375_v11 = vsub.s32 6, %v867_v3 }
  0x13   : > { %v395_v13 = vsub.s32 7, %v867_v3  ;;  %v251_v14 = vadd.s32 16, %v867_v3  ;;  %v888_v15 = vrot.slane %v247_v12, %v255_v5  ;;  %v890_v16 = vrot.slane %v247_v12, %v275_v6 }
  0x14   : > { %v892_v17 = vrot.slane %v247_v12, %v295_v7  ;;  %v894_v18 = vrot.slane %v247_v12, %v315_v8  ;;  %v896_v19 = vrot.slane %v247_v12, %v335_v9  ;;  %v898_v20 = vrot.slane %v247_v12, %v355_v10 }
  0x15   : > { %v900_v21 = vrot.slane %v247_v12, %v375_v11  ;;  %v902_v22 = vrot.slane %v247_v12, %v395_v13  ;;  %vm260_vm1 = vcmp.eq.s32.totalorder %v888_v15, %v252_v4  ;;  %vm280_vm2 = vcmp.eq.s32.totalorder %v890_v16, %v252_v4 }
  0x16   : > { %vm300_vm3 = vcmp.eq.s32.totalorder %v892_v17, %v252_v4  ;;  %vm320_vm4 = vcmp.eq.s32.totalorder %v894_v18, %v252_v4  ;;  %v723_v23 = vsel %vm260_vm1, 1.0, %v813_v2  ;;  %v727_v24 = vsel %vm280_vm2, 1.0, %v813_v2 }
  0x17   : > { %v731_v25 = vsel %vm300_vm3, 1.0, %v813_v2  ;;  %v912_v26 = vadd.s32 8, %v867_v3  ;;  %v292_v27 = vadd.f32 %v727_v24, %v723_v23  ;;  %vm340_vm5 = vcmp.eq.s32.totalorder %v896_v19, %v252_v4 }
  0x18   : > { %vm360_vm6 = vcmp.eq.s32.totalorder %v898_v20, %v252_v4  ;;  %vm380_vm7 = vcmp.eq.s32.totalorder %v900_v21, %v252_v4  ;;  %v735_v28 = vsel %vm320_vm4, 1.0, %v813_v2  ;;  %v739_v29 = vsel %vm340_vm5, 1.0, %v813_v2 }
  0x19   : > { %v743_v30 = vsel %vm360_vm6, 1.0, %v813_v2  ;;  %vm400_vm8 = vcmp.eq.s32.totalorder %v902_v22, %v252_v4  ;;  %v312_v31 = vadd.f32 %v731_v25, %v292_v27  ;;  %v747_v32 = vsel %vm380_vm7, 1.0, %v813_v2 }
  0x1a   : > { %vm259_vm9 = vcmp.eq.s32.totalorder %v888_v15, %v251_v14  ;;  %vm279_vm10 = vcmp.eq.s32.totalorder %v890_v16, %v251_v14  ;;  %vm299_vm11 = vcmp.eq.s32.totalorder %v892_v17, %v251_v14  ;;  %vm319_vm12 = vcmp.eq.s32.totalorder %v894_v18, %v251_v14 }
  0x1b   : > { %v722_v33 = vsel %vm259_vm9, 1.0, %v813_v2  ;;  %v726_v34 = vsel %vm279_vm10, 1.0, %v813_v2  ;;  %v332_v35 = vadd.f32 %v735_v28, %v312_v31  ;;  %v751_v36 = vsel %vm400_vm8, 1.0, %v813_v2 }
  0x1c   : > { %v291_v37 = vadd.f32 %v726_v34, %v722_v33  ;;  %v730_v38 = vsel %vm299_vm11, 1.0, %v813_v2  ;;  %v734_v39 = vsel %vm319_vm12, 1.0, %v813_v2  ;;  %vm339_vm13 = vcmp.eq.s32.totalorder %v896_v19, %v251_v14 }
  0x1d   : > { %vm359_vm14 = vcmp.eq.s32.totalorder %v898_v20, %v251_v14  ;;  %vm379_vm15 = vcmp.eq.s32.totalorder %v900_v21, %v251_v14  ;;  %v352_v40 = vadd.f32 %v739_v29, %v332_v35  ;;  %v738_v42 = vsel %vm339_vm13, 1.0, %v813_v2  ;;  %v489_v29 = vld [vmem:[%s1021_s2] sm:$0xf] }
  0x1e   : > { %v311_v41 = vadd.f32 %v730_v38, %v291_v37  ;;  %vm399_vm1 = vcmp.eq.s32.totalorder %v902_v22, %v251_v14  ;;  %v742_v43 = vsel %vm359_vm14, 1.0, %v813_v2  ;;  %v746_v44 = vsel %vm379_vm15, 1.0, %v813_v2 }
  0x1f   : > { %vm258_vm2 = vcmp.eq.s32.totalorder %v888_v15, %v912_v26  ;;  %vm278_vm3 = vcmp.eq.s32.totalorder %v890_v16, %v912_v26  ;;  %v372_v45 = vadd.f32 %v743_v30, %v352_v40  ;;  %vm298_vm4 = vcmp.eq.s32.totalorder %v892_v17, %v912_v26 }
  0x20   : > { %v331_v46 = vadd.f32 %v734_v39, %v311_v41  ;;  %v721_v47 = vsel %vm258_vm2, 1.0, %v813_v2  ;;  %v725_v48 = vsel %vm278_vm3, 1.0, %v813_v2  ;;  %vm318_vm5 = vcmp.eq.s32.totalorder %v894_v18, %v912_v26 }
  0x21   : > { %v290_v49 = vadd.f32 %v725_v48, %v721_v47  ;;  %vm338_vm6 = vcmp.eq.s32.totalorder %v896_v19, %v912_v26  ;;  %v392_v50 = vadd.f32 %v747_v32, %v372_v45  ;;  %v729_v52 = vsel %vm298_vm4, 1.0, %v813_v2 }
  0x22   : > { %v351_v51 = vadd.f32 %v738_v42, %v331_v46  ;;  %v733_v53 = vsel %vm318_vm5, 1.0, %v813_v2  ;;  %v750_v54 = vsel %vm399_vm1, 1.0, %v813_v2  ;;  %vm358_vm7 = vcmp.eq.s32.totalorder %v898_v20, %v912_v26 }
  0x23   : > { %v310_v55 = vadd.f32 %v729_v52, %v290_v49  ;;  %vm378_vm8 = vcmp.eq.s32.totalorder %v900_v21, %v912_v26  ;;  %v412_v56 = vadd.f32 %v751_v36, %v392_v50  ;;  %v737_v58 = vsel %vm338_vm6, 1.0, %v813_v2  ;;  %v571_v36 = vld [vmem:[%s1023_s4] sm:$0x1] }
  0x24   : > { %v371_v57 = vadd.f32 %v742_v43, %v351_v51  ;;  %v741_v59 = vsel %vm358_vm7, 1.0, %v813_v2  ;;  %v745_v61 = vsel %vm378_vm8, 1.0, %v813_v2  ;;  %vm257_vm9 = vcmp.eq.s32.totalorder %v888_v15, %v867_v3 }
  0x25   : > { %v330_v60 = vadd.f32 %v733_v53, %v310_v55  ;;  %vm277_vm10 = vcmp.eq.s32.totalorder %v890_v16, %v867_v3  ;;  %769 = vmatpush3.msra.mxu0 %v412_v56  ;;  %vm398_vm11 = vcmp.eq.s32.totalorder %v902_v22, %v912_v26  ;;  %v720_v63 = vsel %vm257_vm9, 1.0, %v813_v2  ;;  %v572_v26 = vld [vmem:[#allocation2] sm:$0x1] }
  0x26   : > { %v391_v62 = vadd.f32 %v746_v44, %v371_v57  ;;  %v724_v0 = vsel %vm277_vm10, 1.0, %v813_v2  ;;  %770 = vmatprep.subr.mxu0 %v813_v2  ;;  %vm297_vm12 = vcmp.eq.s32.totalorder %v892_v17, %v867_v3  ;;  %vm317_vm13 = vcmp.eq.s32.totalorder %v894_v18, %v867_v3 }
  0x27   : > { %v350_v1 = vadd.f32 %v737_v58, %v330_v60  ;;  %v289_v4 = vadd.f32 %v724_v0, %v720_v63  ;;  %v728_v7 = vsel %vm297_vm12, 1.0, %v813_v2  ;;  %v732_v8 = vsel %vm317_vm13, 1.0, %v813_v2 }
  0x28   : > { %v411_v6 = vadd.f32 %v750_v54, %v391_v62  ;;  %vm337_vm14 = vcmp.eq.s32.totalorder %v896_v19, %v867_v3  ;;  %vm357_vm15 = vcmp.eq.s32.totalorder %v898_v20, %v867_v3  ;;  %v749_v11 = vsel %vm398_vm11, 1.0, %v813_v2 }
  0x29   : > { %v370_v9 = vadd.f32 %v741_v59, %v350_v1  ;;  %v309_v10 = vadd.f32 %v728_v7, %v289_v4  ;;  %v736_v12 = vsel %vm337_vm14, 1.0, %v813_v2  ;;  %vm377_vm1 = vcmp.eq.s32.totalorder %v900_v21, %v867_v3  ;;  %v413_v21 = vld [vmem:[%s1020_s1] sm:$0xff] }
  0x2a   : > { %771 = vmatpush3.msra.mxu0 %v411_v6  ;;  %v740_v15 = vsel %vm357_vm15, 1.0, %v813_v2  ;;  %vm397_vm2 = vcmp.eq.s32.totalorder %v902_v22, %v867_v3  ;;  %v744_v18 = vsel %vm377_vm1, 1.0, %v813_v2  ;;  %vm414_vm3 = vcmask 261120   ;;  %v490_v22 = vld [vmem:[%s1022_s3] sm:$0xf] }
  0x2b   : > { %772 = vmatprep.subr.mxu0 %v813_v2  ;;  %v390_v13 = vadd.f32 %v745_v61, %v370_v9  ;;  %v329_v14 = vadd.f32 %v732_v8, %v309_v10  ;;  %v748_v20 = vsel %vm397_vm2, 1.0, %v813_v2  ;;  %v815_v25 = vmov 0  }
  0x2c   : > { %800 = vset.pattern.permute.xlu0 %v815_v25  ;;  %vm496_vm4 = vcmask 64512   ;;  %vm586_vm5 = vcmask 1043456   ;;  %vm582_vm6 = vcmask 31744  }
  0x2d   : > { %v410_v16 = vadd.f32 %v749_v11, %v390_v13  ;;  %v349_v17 = vadd.f32 %v736_v12, %v329_v14  ;;  %493 = vperm.xlu0 %800, %v490_v22  }
  0x2f   : > { %773 = vmatpush3.msra.mxu0 %v410_v16  ;;  %v369_v19 = vadd.f32 %v740_v15, %v349_v17 }
  0x30   : > { %774 = vmatprep.subr.mxu0 %v813_v2 }
  0x31   : > { %v389_v23 = vadd.f32 %v744_v18, %v369_v19  ;;  %575 = vperm.xlu0 %800, %v572_v26  }
  0x33   : > { %v409_v24 = vadd.f32 %v748_v20, %v389_v23 }
  0x35   : > { %775 = vmatpush3.msra.mxu0 %v409_v24 }
  0x36   : > { %777 = vmatmul.mubr.msk.f32.vlgmr.msra.gmra.mxu0 %vm414_vm3, %v413_v21 }
  0xa8   : > { %v494_v31 = vpop.permute.xlu0 %493 }
  0xac   : > { %v576_v37 = vpop.permute.xlu0 %575 }
  0xad   : > { %v581_v38 = vrot.slane %v576_v37, %v255_v5 }
  0xf6   : > { %v484_v27 = vpop.f32.mrf.mxu0 }
  0xf7   : > { %v488_v28 = vmul.f32 0.125, %v484_v27 }
  0xf8   : > { %v778_v30 = vpop.f32.mrf.mxu0 }
  0xf9   : > { %780 = vmatpush3.msra.mxu1 %v488_v28 }
  0xfa   : > { %782 = vmatmul.mubr.msk.f32.vlgmr.msra.gmra.mxu1 %vm496_vm4, %v489_v29  ;;  %784 = vmatprep.subr.mxu1 %v813_v2 }
  0xfb   : > { %786 = vmatprep.mubr.msk.f32.mxu1 %vm814_vm0, %v813_v2 }
 0x1ba   : > { %v566_v32 = vpop.f32.mrf.mxu1 }
 0x1bb   : > { %v567_v33 = vadd.f32 %v566_v32, %v494_v31 }
 0x1bc   : > { %v783_v34 = vpop.f32.mrf.mxu1 }
 0x1bd   : > { %v570_v35 = vmax.f32 %v567_v33, 0.0 }
 0x1bf   : > { %785 = vmatpush3.msk.msra.mxu1 %vm586_vm5, %v570_v35 }
 0x1c0   : > { %787 = vmatmul.mubr.msk.f32.vlgmr.msra.gmra.mxu1 %vm582_vm6, %v571_v36 }
 0x280   : > { %v656_v39 = vpop.f32.mrf.mxu1 }
 0x281   : > { %v657_v2 = vadd.f32 %v656_v39, %v581_v38 }
 0x282   : > { %v788_v40 = vpop.f32.mrf.mxu1 }
 0x283   : > { %v756_v41 = vmul.f32 -1.442695, %v657_v2 }
 0x285   : > { %801 = vpow2.f32 %v756_v41 }
 0x292   : > { %v802_v42 = vpop.eup %801 }
 0x293   : > { %v663_v43 = vadd.f32 1.0, %v802_v42 }
 0x295   : > { %803 = vrcp.f32 %v663_v43 }
 0x2a2   : > { %v804_v44 = vpop.eup %803 }
 0x2a3   : > { %666 = vst [vmem:[%s246_s14] sm:$0x1] %v804_v44 }
 0x2a4 PF: > { %s18_s23 = sadd.s32 1, %s811_s23  }
 0x2a5   : > { %p15_p4 = scmp.ge.s32.totalorder %s18_s23, 4  }
 0x2a7   :  { %17 = sbr.rel (!%p15_p4) target bundleno = 3 (0x3), region = 74 }

</bundles_post_ra>
